<compile_context>
chip_gen: v5e
topology: v5e:2x2
jax: 0.10.0
libtpu: 0.0.40
codegen_flags: <defaults>
</compile_context>

<pallas_src>
import jax
import jax.numpy as jnp
from jax.experimental import pallas as pl
from jax.experimental.pallas import tpu as pltpu


IMAGE_SIZE = 8
N_COLOUR_CHANNELS = 3
IN_FEATURES = IMAGE_SIZE * IMAGE_SIZE * N_COLOUR_CHANNELS  # 192
LANES = 128
SUBLANES = 8
MAX_BLOCK_ROWS = 8192  # double-buffered tiles ~24 MiB -> safe on v7x (64 MiB VMEM)


def _round_up(v, m):
    return ((v + m - 1) // m) * m


def _linear_kernel(x_ref, w_ref, b_ref, o_ref):
    # x_ref: (TM, 192)  w_ref: (192, C_pad)  b_ref: (1, C_pad)  o_ref: (TM, C_pad)
    acc = jnp.dot(x_ref[...], w_ref[...], preferred_element_type=jnp.float32)
    o_ref[...] = (acc + b_ref[...]).astype(o_ref.dtype)


def trivial_classifier_forward(x, weight, bias, *, block_rows=MAX_BLOCK_ROWS,
                               cast_inputs_to_bf16=False):
    """Forward pass of TrivialClassifier.

    Args:
      x: (N, 3, 8, 8) float32 NCHW input (PyTorch convention), or already-flattened
         (N, 192) input (preferred: pushes the flatten upstream and avoids a relayout).
      weight: (num_classes, 192) float32, same layout as torch nn.Linear.weight.
      bias:   (num_classes,) float32.
      block_rows: target rows of x processed per grid step (batch tile size).
      cast_inputs_to_bf16: opt-in bf16 x/weight (f32 accumulation); slight numerics change.

    Returns:
      (N, num_classes) float32 logits.
    """
    n = x.shape[0]
    num_classes = weight.shape[0]

    # nn.Flatten (row-major NCHW).  Accept pre-flattened input too.
    x_flat = x.reshape(n, IN_FEATURES) if x.ndim > 2 else x

    in_dtype = jnp.bfloat16 if cast_inputs_to_bf16 else jnp.float32
    x_flat = x_flat.astype(in_dtype)

    # Lane-dense output: zero-pad the class dimension up to a multiple of 128 lanes
    # (unmasked vst, dense writeback DMA); wrapper slices [:, :num_classes] at the end.
    c_pad = _round_up(max(num_classes, 1), LANES)
    w_t = jnp.zeros((IN_FEATURES, c_pad), in_dtype)
    w_t = w_t.at[:, :num_classes].set(jnp.transpose(weight).astype(in_dtype))
    b_2d = jnp.zeros((1, c_pad), jnp.float32)
    b_2d = b_2d.at[:, :num_classes].set(bias.astype(jnp.float32))

    # Row tile selection:
    #   * multiple of 8 sublanes (or the full batch extent when N <= 8),
    #   * capped at MAX_BLOCK_ROWS (v7x VMEM budget),
    #   * capped at round_up(ceil(N/2), 8) so the parallel axis has >= 2 grid steps
    #     and both v7x TensorCores get work.
    # No batch padding: grid = cdiv(N, TM); the ragged last block is boundary-clamped.
    if n <= SUBLANES:
        tm = n  # full-extent block (allowed for any N)
    else:
        tm = max(SUBLANES, (min(block_rows, MAX_BLOCK_ROWS) // SUBLANES) * SUBLANES)
        tm = min(tm, _round_up(pl.cdiv(n, 2), SUBLANES))
    grid = (pl.cdiv(n, tm),)

    elem = jnp.dtype(in_dtype).itemsize
    # VMEM estimate: K=192 pads to 256 lanes for the x tile; everything double-buffered.
    vmem_needed = (2 * tm * 256 * elem                  # x tiles
                   + 2 * tm * c_pad * 4                 # out tiles (f32)
                   + 2 * IN_FEATURES * c_pad * elem     # weight
                   + 2 * SUBLANES * c_pad * 4)          # bias (sublane-padded)
    vmem_limit = int(min(max(1.4 * vmem_needed + (2 << 20), 16 << 20), 48 << 20))

    cost = pl.CostEstimate(
        flops=2 * n * IN_FEATURES * c_pad,
        transcendentals=0,
        bytes_accessed=(n * IN_FEATURES * elem
                        + IN_FEATURES * c_pad * elem
                        + c_pad * 4
                        + n * c_pad * 4),
    )

    out = pl.pallas_call(
        _linear_kernel,
        out_shape=jax.ShapeDtypeStruct((n, c_pad), jnp.float32),
        grid_spec=pltpu.PrefetchScalarGridSpec(
            num_scalar_prefetch=0,
            grid=grid,
            in_specs=[
                # Batch-tiled input: new block each step -> double-buffered DMA.
                pl.BlockSpec((tm, IN_FEATURES), lambda i: (i, 0)),
                # Weight/bias: constant index_map -> stay resident in VMEM.
                pl.BlockSpec((IN_FEATURES, c_pad), lambda i: (0, 0)),
                pl.BlockSpec((1, c_pad), lambda i: (0, 0)),
            ],
            out_specs=pl.BlockSpec((tm, c_pad), lambda i: (i, 0)),
        ),
        compiler_params=pltpu.CompilerParams(
            # Batch tiles are independent -> megacore / v7x 2-TC sharding.
            dimension_semantics=("parallel",),
            vmem_limit_bytes=vmem_limit,
            # Let XLA fuse the NCHW->(N,192) flatten (and optional bf16 cast) into the
            # x operand instead of materializing a relayout copy in HBM.
            allow_input_fusion=[True, False, False],
        ),
        cost_estimate=cost,
    )(x_flat, w_t, b_2d)

    # Strip the class-lane padding (no batch padding to strip anymore).
    return out[:, :num_classes]


if __name__ == "__main__":
    num_classes = 10

    key = jax.random.PRNGKey(0)
    kx, kw, kb = jax.random.split(key, 3)

    # Deterministic synthetic parameters (shapes match nn.Linear(192, num_classes)).
    bound = 1.0 / (IN_FEATURES ** 0.5)
    weight = jax.random.uniform(kw, (num_classes, IN_FEATURES),
                                minval=-bound, maxval=bound, dtype=jnp.float32)
    bias = jax.random.uniform(kb, (num_classes,),
                              minval=-bound, maxval=bound, dtype=jnp.float32)

    # 1) Small batch: single full-extent block.
    batch = 2
    x = jax.random.normal(kx, (batch, N_COLOUR_CHANNELS, IMAGE_SIZE, IMAGE_SIZE),
                          dtype=jnp.float32)
    out = jax.block_until_ready(trivial_classifier_forward(x, weight, bias))
    ref = x.reshape(batch, IN_FEATURES) @ weight.T + bias
    assert out.shape == (batch, num_classes)
    assert jnp.allclose(out, ref, atol=1e-5, rtol=1e-5)

    # 2) Multi-tile batch with a ragged last block (grid of 3, rows 32..47 OOB past 40).
    batch2 = 40
    x2 = jax.random.normal(jax.random.PRNGKey(1),
                           (batch2, N_COLOUR_CHANNELS, IMAGE_SIZE, IMAGE_SIZE),
                           dtype=jnp.float32)
    out2 = jax.block_until_ready(
        trivial_classifier_forward(x2, weight, bias, block_rows=16))
    ref2 = x2.reshape(batch2, IN_FEATURES) @ weight.T + bias
    assert out2.shape == (batch2, num_classes)
    assert jnp.allclose(out2, ref2, atol=1e-5, rtol=1e-5)

    # 3) Non-multiple-of-8 batch > 8: TM=8, two grid steps, ragged last block.
    batch3 = 10
    x3 = jax.random.normal(jax.random.PRNGKey(2),
                           (batch3, N_COLOUR_CHANNELS, IMAGE_SIZE, IMAGE_SIZE),
                           dtype=jnp.float32)
    out3 = jax.block_until_ready(trivial_classifier_forward(x3, weight, bias))
    ref3 = x3.reshape(batch3, IN_FEATURES) @ weight.T + bias
    assert out3.shape == (batch3, num_classes)
    assert jnp.allclose(out3, ref3, atol=1e-5, rtol=1e-5)

    # 4) Opt-in bf16 input/weight path (f32 accumulation) — looser tolerance.
    out_bf16 = jax.block_until_ready(
        trivial_classifier_forward(x2, weight, bias, cast_inputs_to_bf16=True))
    assert jnp.allclose(out_bf16, ref2, atol=5e-2, rtol=5e-2)

    print("KERNEL_OK")
</pallas_src>

<mosaic_0001>
module attributes {stable_mosaic.version = 11 : i64} {
  func.func @_linear_kernel(%arg0: i32, %arg1: memref<2x192xf32, #tpu.memory_space<vmem>>, %arg2: memref<192x128xf32, #tpu.memory_space<vmem>>, %arg3: memref<1x128xf32, #tpu.memory_space<vmem>>, %arg4: memref<2x128xf32, #tpu.memory_space<vmem>>) attributes {dimension_semantics = [#tpu.dimension_semantics<parallel>], iteration_bounds = array<i64: 1>, scalar_prefetch = 0 : i64, scratch_operands = 0 : i64, tpu.core_type = #tpu.core_type<tc>, window_params = [{transform_indices = @transform_0, window_bounds = array<i64: 2, 192>}, {pipeline_mode = #tpu.pipeline_mode<synchronous>, transform_indices = @transform_1, window_bounds = array<i64: 192, 128>}, {pipeline_mode = #tpu.pipeline_mode<synchronous>, transform_indices = @transform_2, window_bounds = array<i64: 1, 128>}, {transform_indices = @transform_3, window_bounds = array<i64: 2, 128>}]} {
    %c0 = arith.constant 0 : index
    %c0_0 = arith.constant 0 : index
    %0 = vector.load %arg1[%c0, %c0_0] : memref<2x192xf32, #tpu.memory_space<vmem>>, vector<2x192xf32>
    %c0_1 = arith.constant 0 : index
    %c0_2 = arith.constant 0 : index
    %1 = vector.load %arg2[%c0_1, %c0_2] : memref<192x128xf32, #tpu.memory_space<vmem>>, vector<192x128xf32>
    %cst = arith.constant dense<0.000000e+00> : vector<2x128xf32>
    %2 = tpu.matmul %0, %1, %cst {dimension_numbers = #tpu.dot_dimension_numbers<[1], [0], [0], [1], [0, 0, 1, 1], [], []>} : vector<2x192xf32>, vector<192x128xf32>, vector<2x128xf32> -> vector<2x128xf32>
    %c0_3 = arith.constant 0 : index
    %c0_4 = arith.constant 0 : index
    %3 = vector.load %arg3[%c0_3, %c0_4] : memref<1x128xf32, #tpu.memory_space<vmem>>, vector<1x128xf32>
    %4 = vector.broadcast %3 : vector<1x128xf32> to vector<2x128xf32>
    %5 = arith.addf %2, %4 : vector<2x128xf32>
    %c0_5 = arith.constant 0 : index
    %c0_6 = arith.constant 0 : index
    %6 = vector.load %arg4[%c0_5, %c0_6] : memref<2x128xf32, #tpu.memory_space<vmem>>, vector<2x128xf32>
    tpu.vector_store %arg4[%c0_5, %c0_6], %5 {strides = array<i32>} : memref<2x128xf32, #tpu.memory_space<vmem>>, vector<2x128xf32>,
    return
  }
  func.func @transform_0(%arg0: i32) -> (i32, i32) {
    %c0_i32 = arith.constant 0 : i32
    %c0_i32_0 = arith.constant 0 : i32
    return %arg0, %c0_i32 : i32, i32
  }
  func.func @transform_1(%arg0: i32) -> (i32, i32) {
    %c0_i32 = arith.constant 0 : i32
    %c0_i32_0 = arith.constant 0 : i32
    %c0_i32_1 = arith.constant 0 : i32
    return %c0_i32, %c0_i32_0 : i32, i32
  }
  func.func @transform_2(%arg0: i32) -> (i32, i32) {
    %c0_i32 = arith.constant 0 : i32
    %c0_i32_0 = arith.constant 0 : i32
    %c0_i32_1 = arith.constant 0 : i32
    return %c0_i32, %c0_i32_0 : i32, i32
  }
  func.func @transform_3(%arg0: i32) -> (i32, i32) {
    %c0_i32 = arith.constant 0 : i32
    %c0_i32_0 = arith.constant 0 : i32
    return %arg0, %c0_i32 : i32, i32
  }
}

</mosaic_0001>

<bundles_post_ra>
// kernel: tpu_custom_call.1
= control target key start
LH: loop header
LB: loop body
LE: loop exit
PB: predicated region body
PF: predicated region fallthrough
CT: control target
= control target key end

     0   :  { %8 = vsyncpa [#allocation3], 0  ;;  %s263_s0 = inlined_call_operand.hbm [shape: f32[2,192], index: 0, kind: input, shape index: {}]   ;;  %s264_s1 = inlined_call_operand.hbm [shape: f32[192,128], index: 1, kind: input, shape index: {}]   ;;  %s265_s2 = inlined_call_operand.vmem [shape: f32[1,128], index: 2, kind: input, shape index: {}]   ;;  %s266_s3 = inlined_call_operand.hbm [shape: f32[2,128], index: 3, kind: output, shape index: {}]  }
   0x1   :  { %9 = vsyncpa [#allocation6], 0 }
   0x2   :  { %10 = vsyncpa [#allocation4], 0  ;;  %s16_s14 = sshll.u32 %s263_s0, 4  ;;  %s226_s15 = smov [#allocation2]   ;;  %s17_s14 = int_to_ptr.hbm [resolvable:$true] %s16_s14 }
   0x3   :  { %s18_s16 = sshll.u32 %s226_s15, 4  ;;  %s26_s19 = sshll.u32 %s264_s1, 4  ;;  %s19_s16 = int_to_ptr.vmem [resolvable:$true] %s18_s16  ;;  %s27_s19 = int_to_ptr.hbm [resolvable:$true] %s26_s19 }
   0x4   :  { %21 = dma.hbm_to_vmem [thread:$0]  %s17_s14, 64, %s19_s16, [#allocation3]  }
   0x5   :  { %s227_s20 = smov [#allocation5]   ;;  %s228_s22 = smov 128  }
   0x6   :  { %s28_s21 = sshll.u32 %s227_s20, 4  ;;  %s229_s23 = smov 8   ;;  %s29_s21 = int_to_ptr.vmem [resolvable:$true] %s28_s21 }
   0x7   :  { %34 = dma.hbm_to_vmem [thread:$0]  %s27_s19, 3072, %s29_s21, [#allocation6], %s228_s22, %s228_s22, %s229_s23  }
   0x8   :  { %220 = dma.done.wait [#allocation3], 64  }
   0x9   :  { %221 = vsyncadd [#allocation3], 4294967232 }
   0xa   :  { %222 = dma.done.wait [#allocation6], 3072  }
   0xb   :  { %223 = vsyncadd [#allocation6], 4294964224  ;;  %v61_v0 = vld [vmem:[#allocation5 + $0x78] sm:$0xff]  ;;  %v60_v1 = vld [vmem:[#allocation5 + $0x70] sm:$0xff]  ;;  %vm79_vm0 = vcmask 523264   ;;  %s230_s24 = smov [#allocation7]  }
   0xc   :  { %82 = vmatpush.msra.mxu0 %v61_v0  ;;  %v59_v2 = vld [vmem:[#allocation5 + $0x68] sm:$0xff]  ;;  %v69_v3 = vld [vmem:[#allocation5 + $0xb8] sm:$0xff]  ;;  %v58_v4 = vld [vmem:[#allocation5 + $0x60] sm:$0xff]  ;;  %s128_s25 = sshll.u32 %s230_s24, 4  ;;  %s130_s28 = sshll.u32 %s266_s3, 4  ;;  %s129_s25 = int_to_ptr.vmem [resolvable:$true] %s128_s25  ;;  %s131_s28 = int_to_ptr.hbm [resolvable:$true] %s130_s28 }
   0xd   :  { %110 = vmatpush.msra.mxu1 %v69_v3  ;;  %v68_v5 = vld [vmem:[#allocation5 + $0xb0] sm:$0xff]  ;;  %v67_v6 = vld [vmem:[#allocation5 + $0xa8] sm:$0xff]  ;;  %v57_v7 = vld [vmem:[#allocation5 + $0x58] sm:$0xff] }
   0xe   :  { %83 = vmatpush.msra.mxu0 %v60_v1  ;;  %v66_v8 = vld [vmem:[#allocation5 + $0xa0] sm:$0xff]  ;;  %v45_v9 = vld [vmem:[#allocation2] sm:$0xf]  ;;  %v56_v10 = vld [vmem:[#allocation5 + $0x50] sm:$0xff] }
   0xf   :  { %111 = vmatpush.msra.mxu1 %v68_v5  ;;  %75 = vst [vmem:[#allocation1] ss:$4 sm:$0xff] %v45_v9  ;;  %v65_v11 = vld [vmem:[#allocation5 + $0x98] sm:$0xff]  ;;  %v55_v12 = vld [vmem:[#allocation5 + $0x48] sm:$0xff]  ;;  %v64_v13 = vld [vmem:[#allocation5 + $0x90] sm:$0xff] }
  0x10   :  { %84 = vmatpush.msra.mxu0 %v59_v2  ;;  %v54_v14 = vld [vmem:[#allocation5 + $0x40] sm:$0xff]  ;;  %v63_v15 = vld [vmem:[#allocation5 + $0x88] sm:$0xff]  ;;  %v53_v16 = vld [vmem:[#allocation5 + $0x38] sm:$0xff] }
  0x11   :  { %112 = vmatpush.msra.mxu1 %v67_v6  ;;  %v62_v17 = vld [vmem:[#allocation5 + $0x80] sm:$0xff]  ;;  %v52_v18 = vld [vmem:[#allocation5 + $0x30] sm:$0xff]  ;;  %v51_v20 = vld [vmem:[#allocation5 + $0x28] sm:$0xff] }
  0x12   :  { %85 = vmatpush.msra.mxu0 %v58_v4  ;;  %v50_v21 = vld [vmem:[#allocation5 + $0x20] sm:$0xff]  ;;  %v49_v22 = vld [vmem:[#allocation5 + $0x18] sm:$0xff]  ;;  %v48_v23 = vld [vmem:[#allocation5 + $0x10] sm:$0xff] }
  0x13   :  { %113 = vmatpush.msra.mxu1 %v66_v8  ;;  %v47_v24 = vld [vmem:[#allocation5 + $0x8] sm:$0xff]  ;;  %v46_v25 = vld [vmem:[#allocation5] sm:$0xff]  ;;  %v147_v27 = vld [vmem:[%s265_s2] ss:$0 sm:$0xff] }
  0x14   :  { %86 = vmatpush.msra.mxu0 %v57_v7 }
  0x15   :  { %114 = vmatpush.msra.mxu1 %v65_v11 }
  0x16   :  { %87 = vmatpush.msra.mxu0 %v56_v10  ;;  %v77_v19 = vld.sshfl [vmem:[#allocation1 + $0x8] sm:$0xff pattern:$0x73625140]  ;;  %v76_v26 = vld.sshfl [vmem:[#allocation1] sm:$0xff pattern:$0x73625140] }
  0x17   :  { %115 = vmatpush.msra.mxu1 %v64_v13 }
  0x18   :  { %88 = vmatpush.msra.mxu0 %v55_v12 }
  0x19   :  { %116 = vmatpush.msra.mxu1 %v63_v15 }
  0x1a   :  { %89 = vmatpush.msra.mxu0 %v54_v14 }
  0x1b   :  { %117 = vmatpush.msra.mxu1 %v62_v17 }
  0x1c   :  { %90 = vmatpush.msra.mxu0 %v53_v16  ;;  %141 = vmatmul.msk.f32.vlgmr.msra.gmra.mxu1 %vm79_vm0, %v77_v19 }
  0x1e   :  { %91 = vmatpush.msra.mxu0 %v52_v18 }
  0x20   :  { %92 = vmatpush.msra.mxu0 %v51_v20 }
  0x22   :  { %93 = vmatpush.msra.mxu0 %v50_v21 }
  0x24   :  { %94 = vmatpush.msra.mxu0 %v49_v22 }
  0x26   :  { %95 = vmatpush.msra.mxu0 %v48_v23 }
  0x28   :  { %96 = vmatpush.msra.mxu0 %v47_v24 }
  0x2a   :  { %97 = vmatpush.msra.mxu0 %v46_v25 }
  0x2b   :  { %98 = vmatmul.f32.vlgmr.msra.gmra.mxu0 %v76_v26 }
  0x99   :  { %v119_v29 = vpop.f32.mrf.mxu1 }
  0xa8   :  { %v99_v28 = vpop.f32.mrf.mxu0 }
  0xa9   :  { %v100_v30 = vadd.f32 %v147_v27, %v99_v28 }
  0xab   :  { %v120_v31 = vadd.f32 %v119_v29, %v100_v30 }
  0xad   :  { %122 = vst [vmem:[#allocation7] sm:$0x3] %v120_v31 }
  0xae   :  { %133 = dma.vmem_to_hbm [thread:$0]  %s129_s25, 32, %s131_s28, [#allocation4]  }
  0xaf   :  { %224 = dma.done.wait [#allocation4], 32  }
  0xb0   :  { %225 = vsyncadd [#allocation4], 4294967264 }
  0xb1   :  { %138 = vsyncpa [#allocation3], 1 }
  0xb2   :  { %139 = vsyncpa [#allocation6], 1 }
  0xb3   :  { %140 = vsyncpa [#allocation4], 1 }

</bundles_post_ra>
